<compile_context>
chip_gen: v7x
topology: tpu7x:2x2x1
jax: 0.10.0
libtpu: 0.0.40
codegen_flags: <defaults>
</compile_context>

<pallas_src>
import functools
import math

import jax
import jax.numpy as jnp
from jax import lax
from jax.experimental import pallas as pl
from jax.experimental.pallas import tpu as pltpu


def _spatial_attention_kernel(w_ref, b_ref, x_ref, o_ref, *, C, H, W):
    """One grid step = `nb` batch planes.

    w_ref: SMEM (18,) f32 -- conv weight (1,2,3,3) flattened ic*9 + ky*3 + kx;
                             avg-channel (ic=0) taps pre-scaled by 1/C.
    b_ref: SMEM (1,)  f32 -- conv bias.
    x_ref: VMEM (nb*C, L) -- row b*C + c = batch b, channel c; L = H*W.
    o_ref: VMEM (nb, L)   -- lane-dense output plane per batch.
    """
    nb, L = o_ref.shape

    # --- dense block load + fused per-batch sum/max channel reduction ------
    x = x_ref[...].astype(jnp.float32)                       # (nb*C, L)
    s_rows, m_rows = [], []
    for i in range(nb):
        xi = x[i * C:(i + 1) * C, :]                         # (C, L) static slice
        s_rows.append(jnp.sum(xi, axis=0, keepdims=True))    # channel sum
        m_rows.append(jnp.max(xi, axis=0, keepdims=True))    # channel max
    s = s_rows[0] if nb == 1 else jnp.concatenate(s_rows, axis=0)   # (nb, L)
    m = m_rows[0] if nb == 1 else jnp.concatenate(m_rows, axis=0)   # (nb, L)

    # --- hoisted scalar weights & bias (read once) --------------------------
    w_avg = [w_ref[k] for k in range(9)]      # pre-scaled by 1/C in wrapper
    w_max = [w_ref[9 + k] for k in range(9)]
    bias = b_ref[0]

    # --- edge-validity masks for the zero-padded 3x3 conv -------------------
    # Built once per step at (1, L); jnp.where broadcasts them over nb.
    lane = lax.broadcasted_iota(jnp.int32, (1, L), 1)
    col = lane % W                            # cheap for power-of-two W
    not_left = col != 0                       # neighbor j-1 exists
    not_right = col != (W - 1)                # neighbor j+1 exists
    not_top = lane >= W                       # neighbor i-1 exists
    not_bot = lane < (H - 1) * W              # neighbor i+1 exists
    tap_mask = {
        (-1, -1): not_top & not_left, (-1, 0): not_top, (-1, 1): not_top & not_right,
        (0, -1): not_left,                               (0, 1): not_right,
        (1, -1): not_bot & not_left,  (1, 0): not_bot,   (1, 1): not_bot & not_right,
    }

    # --- 3x3 conv: center tap carries bias; 8 taps = combine -> roll -> mask
    acc = w_avg[4] * s + w_max[4] * m + bias
    for dy in (-1, 0, 1):
        for dx in (-1, 0, 1):
            if dy == 0 and dx == 0:
                continue
            k = (dy + 1) * 3 + (dx + 1)
            plane = w_avg[k] * s + w_max[k] * m                  # VPU combine
            d = dy * W + dx
            plane = pltpu.roll(plane, shift=(-d) % L, axis=1)    # XLU lane roll
            acc = acc + jnp.where(tap_mask[(dy, dx)], plane, 0.0)

    out = acc * jax.nn.sigmoid(acc)            # y * sigmoid(y)  (SiLU)
    o_ref[...] = out.astype(o_ref.dtype)


def spatial_attention(x, conv_w, conv_b, *, block_budget_bytes=8 * 1024 * 1024):
    """x: (N, C, H, W); conv_w: (1, 2, 3, 3); conv_b: (1,). Returns (N, 1, H, W)."""
    N, C, H, W = x.shape
    L = H * W
    itemsize = jnp.dtype(x.dtype).itemsize
    rup = lambda v, m: -(-v // m) * m

    # ---- batch blocking -----------------------------------------------------
    nb_align = 8 // math.gcd(C, 8)             # smallest nb with nb*C % 8 == 0
    per_batch = C * L * itemsize               # exact bytes/batch (no C padding)
    if N < 16:
        # Tiny batch: one grid step covering the whole (padded) array; block
        # shape equals the full array dims so no sublane-alignment issue, and
        # splitting across cores would only add padded work.
        nb = rup(N, nb_align)
    else:
        # Multi-step: nb multiple of 8 keeps both the (nb*C, L) input block and
        # the (nb, L) output block sublane-aligned (unmasked vld/vst, exact DMA).
        nb_budget = (block_budget_bytes // per_batch) // 8 * 8
        if nb_budget < 8:
            nb_budget = 8  # TODO(synk): needs an H-tile (halo) axis for planes this large
        nb = min(nb_budget,
                 rup(-(-N // 2), 8),           # keep >= 2 grid steps (v7x megacore)
                 64)                            # code-size / per-step sweet spot
    N_pad = rup(N, nb)
    grid = (N_pad // nb,)

    # ---- lane-dense layout --------------------------------------------------
    # (N, C, H, W) -> (N*C, L): lane axis = H*W (dense), sublane axis = exact
    # N*C rows.  (One extra HBM relayout pass; drop if producer emits flat.)
    x2 = x.reshape(N * C, L)
    if N_pad > N:
        x2 = jnp.pad(x2, ((0, (N_pad - N) * C), (0, 0)))

    # Fold the 1/C mean scale into the avg-channel (input channel 0) taps.
    w2 = conv_w.reshape(2, 9).astype(jnp.float32)
    w_flat = (w2 * jnp.array([[1.0 / C], [1.0]], jnp.float32)).reshape(-1)
    b = conv_b.reshape(-1).astype(jnp.float32)

    # ---- VMEM budget: double-buffered blocks + f32 intermediates ------------
    in_blk = rup(nb * C, 8) * L * itemsize
    out_blk = rup(nb, 8) * L * itemsize
    interm = (rup(nb * C, 8) + 6 * rup(nb, 8) + 8) * L * 4
    vmem_limit = int(min(max(2 * in_blk + 2 * out_blk + interm + (4 << 20),
                             32 << 20),
                         100 << 20))

    out2 = pl.pallas_call(
        functools.partial(_spatial_attention_kernel, C=C, H=H, W=W),
        out_shape=jax.ShapeDtypeStruct((N_pad, L), x.dtype),
        grid=grid,
        in_specs=[
            pl.BlockSpec(memory_space=pltpu.SMEM),             # conv weights (18,)
            pl.BlockSpec(memory_space=pltpu.SMEM),             # bias (1,)
            pl.BlockSpec((nb * C, L), lambda n: (n, 0)),       # nb batches' channels
        ],
        out_specs=pl.BlockSpec((nb, L), lambda n: (n, 0)),     # lane-dense output
        compiler_params=pltpu.CompilerParams(
            dimension_semantics=("parallel",),
            vmem_limit_bytes=vmem_limit,
        ),
    )(w_flat, b, x2)

    return out2[:N].reshape(N, 1, H, W)


def spatial_attention_ref(x, conv_w, conv_b):
    """Plain-JAX reference mirroring the PyTorch module."""
    avg = jnp.mean(x, axis=1, keepdims=True)
    mx = jnp.max(x, axis=1, keepdims=True)
    feat = jnp.concatenate([avg, mx], axis=1)            # (N, 2, H, W)
    y = lax.conv_general_dilated(
        feat, conv_w, window_strides=(1, 1), padding=((1, 1), (1, 1)),
        dimension_numbers=("NCHW", "OIHW", "NCHW"),
        precision=lax.Precision.HIGHEST)
    y = y + conv_b.reshape(1, -1, 1, 1)
    return y * jax.nn.sigmoid(y)


if __name__ == "__main__":
    key = jax.random.PRNGKey(0)
    kx, kw, kb = jax.random.split(key, 3)

    N, C, H, W = 2, 4, 16, 16
    x = jax.random.normal(kx, (N, C, H, W), dtype=jnp.float32)

    # Deterministic synthetic Conv2d(2, 1, 3, padding=1) parameters.
    conv_w = jax.random.normal(kw, (1, 2, 3, 3), dtype=jnp.float32) * 0.1
    conv_b = jax.random.normal(kb, (1,), dtype=jnp.float32) * 0.1

    out = spatial_attention(x, conv_w, conv_b)
    out = jax.block_until_ready(out)

    ref = spatial_attention_ref(x, conv_w, conv_b)
    assert out.shape == (N, 1, H, W)
    assert jnp.allclose(out, ref, atol=1e-5, rtol=1e-5), "mismatch vs reference"

    print("KERNEL_OK")
</pallas_src>

<mosaic_0001>
module attributes {stable_mosaic.version = 11 : i64} {
  func.func @_spatial_attention_kernel(%arg0: i32, %arg1: memref<18xf32, #tpu.memory_space<smem>>, %arg2: memref<1xf32, #tpu.memory_space<smem>>, %arg3: memref<8x256xf32, #tpu.memory_space<vmem>>, %arg4: memref<2x256xf32, #tpu.memory_space<vmem>>) attributes {dimension_semantics = [#tpu.dimension_semantics<parallel>], iteration_bounds = array<i64: 1>, scalar_prefetch = 0 : i64, scratch_operands = 0 : i64, tpu.core_type = #tpu.core_type<tc>, window_params = [{transform_indices = @transform_0, window_bounds = array<i64: 18>}, {transform_indices = @transform_1, window_bounds = array<i64: 1>}, {transform_indices = @transform_2, window_bounds = array<i64: 8, 256>}, {transform_indices = @transform_3, window_bounds = array<i64: 2, 256>}]} {
    %c0 = arith.constant 0 : index
    %c0_0 = arith.constant 0 : index
    %0 = vector.load %arg3[%c0, %c0_0] : memref<8x256xf32, #tpu.memory_space<vmem>>, vector<8x256xf32>
    %1 = vector.extract_strided_slice %0 {offsets = [0, 0], sizes = [4, 256], strides = [1, 1]} : vector<8x256xf32> to vector<4x256xf32>
    %cst = arith.constant dense<0.000000e+00> : vector<256xf32>
    %2 = vector.multi_reduction <add>, %1, %cst [0] : vector<4x256xf32> to vector<256xf32>
    %3 = vector.shape_cast %2 : vector<256xf32> to vector<1x256xf32>
    %cst_1 = arith.constant dense<0xFF800000> : vector<256xf32>
    %4 = vector.multi_reduction <maximumf>, %1, %cst_1 [0] : vector<4x256xf32> to vector<256xf32>
    %5 = vector.shape_cast %4 : vector<256xf32> to vector<1x256xf32>
    %6 = vector.extract_strided_slice %0 {offsets = [4, 0], sizes = [4, 256], strides = [1, 1]} : vector<8x256xf32> to vector<4x256xf32>
    %cst_2 = arith.constant dense<0.000000e+00> : vector<256xf32>
    %7 = vector.multi_reduction <add>, %6, %cst_2 [0] : vector<4x256xf32> to vector<256xf32>
    %8 = vector.shape_cast %7 : vector<256xf32> to vector<1x256xf32>
    %cst_3 = arith.constant dense<0xFF800000> : vector<256xf32>
    %9 = vector.multi_reduction <maximumf>, %6, %cst_3 [0] : vector<4x256xf32> to vector<256xf32>
    %10 = vector.shape_cast %9 : vector<256xf32> to vector<1x256xf32>
    %11 = tpu.concatenate %3, %8 in 0 : vector<1x256xf32>, vector<1x256xf32> -> vector<2x256xf32>
    %12 = tpu.concatenate %5, %10 in 0 : vector<1x256xf32>, vector<1x256xf32> -> vector<2x256xf32>
    %c0_4 = arith.constant 0 : index
    %13 = memref.load %arg1[%c0_4] : memref<18xf32, #tpu.memory_space<smem>>
    %c1 = arith.constant 1 : index
    %14 = memref.load %arg1[%c1] : memref<18xf32, #tpu.memory_space<smem>>
    %c2 = arith.constant 2 : index
    %15 = memref.load %arg1[%c2] : memref<18xf32, #tpu.memory_space<smem>>
    %c3 = arith.constant 3 : index
    %16 = memref.load %arg1[%c3] : memref<18xf32, #tpu.memory_space<smem>>
    %c4 = arith.constant 4 : index
    %17 = memref.load %arg1[%c4] : memref<18xf32, #tpu.memory_space<smem>>
    %c5 = arith.constant 5 : index
    %18 = memref.load %arg1[%c5] : memref<18xf32, #tpu.memory_space<smem>>
    %c6 = arith.constant 6 : index
    %19 = memref.load %arg1[%c6] : memref<18xf32, #tpu.memory_space<smem>>
    %c7 = arith.constant 7 : index
    %20 = memref.load %arg1[%c7] : memref<18xf32, #tpu.memory_space<smem>>
    %c8 = arith.constant 8 : index
    %21 = memref.load %arg1[%c8] : memref<18xf32, #tpu.memory_space<smem>>
    %c9 = arith.constant 9 : index
    %22 = memref.load %arg1[%c9] : memref<18xf32, #tpu.memory_space<smem>>
    %c10 = arith.constant 10 : index
    %23 = memref.load %arg1[%c10] : memref<18xf32, #tpu.memory_space<smem>>
    %c11 = arith.constant 11 : index
    %24 = memref.load %arg1[%c11] : memref<18xf32, #tpu.memory_space<smem>>
    %c12 = arith.constant 12 : index
    %25 = memref.load %arg1[%c12] : memref<18xf32, #tpu.memory_space<smem>>
    %c13 = arith.constant 13 : index
    %26 = memref.load %arg1[%c13] : memref<18xf32, #tpu.memory_space<smem>>
    %c14 = arith.constant 14 : index
    %27 = memref.load %arg1[%c14] : memref<18xf32, #tpu.memory_space<smem>>
    %c15 = arith.constant 15 : index
    %28 = memref.load %arg1[%c15] : memref<18xf32, #tpu.memory_space<smem>>
    %c16 = arith.constant 16 : index
    %29 = memref.load %arg1[%c16] : memref<18xf32, #tpu.memory_space<smem>>
    %c17 = arith.constant 17 : index
    %30 = memref.load %arg1[%c17] : memref<18xf32, #tpu.memory_space<smem>>
    %c0_5 = arith.constant 0 : index
    %31 = memref.load %arg2[%c0_5] : memref<1xf32, #tpu.memory_space<smem>>
    %32 = tpu.iota {dimensions = array<i32: 1>} : vector<1x256xi32>
    %c16_i32 = arith.constant 16 : i32
    %c0_i32 = arith.constant 0 : i32
    %33 = arith.cmpi eq, %c16_i32, %c0_i32 : i32
    %c1_i32 = arith.constant 1 : i32
    %34 = arith.select %33, %c1_i32, %c16_i32 : i32
    %35 = vector.broadcast %34 : i32 to vector<1x256xi32>
    %36 = arith.remsi %32, %35 : vector<1x256xi32>
    %c0_i32_6 = arith.constant 0 : i32
    %37 = vector.broadcast %c0_i32_6 : i32 to vector<1x256xi32>
    %38 = arith.cmpi ne, %36, %37 : vector<1x256xi32>
    %c0_i32_7 = arith.constant 0 : i32
    %39 = vector.broadcast %c0_i32_7 : i32 to vector<1x256xi32>
    %40 = arith.cmpi slt, %36, %39 : vector<1x256xi32>
    %c0_i32_8 = arith.constant 0 : i32
    %41 = arith.cmpi slt, %34, %c0_i32_8 : i32
    %42 = vector.broadcast %41 : i1 to vector<1x256xi1>
    %43 = vector.broadcast %42 : vector<1x256xi1> to vector<1x256xi1>
    %44 = arith.xori %40, %43 : vector<1x256xi1>
    %45 = arith.andi %44, %38 : vector<1x256xi1>
    %46 = vector.broadcast %34 : i32 to vector<1x256xi32>
    %47 = arith.addi %36, %46 : vector<1x256xi32>
    %48 = arith.select %45, %47, %36 : vector<1x256xi1>, vector<1x256xi32>
    %c0_i32_9 = arith.constant 0 : i32
    %49 = vector.broadcast %c0_i32_9 : i32 to vector<1x256xi32>
    %50 = arith.cmpi ne, %48, %49 : vector<1x256xi32>
    %c15_i32 = arith.constant 15 : i32
    %51 = vector.broadcast %c15_i32 : i32 to vector<1x256xi32>
    %52 = arith.cmpi ne, %48, %51 : vector<1x256xi32>
    %c16_i32_10 = arith.constant 16 : i32
    %53 = vector.broadcast %c16_i32_10 : i32 to vector<1x256xi32>
    %54 = arith.cmpi sge, %32, %53 : vector<1x256xi32>
    %c240_i32 = arith.constant 240 : i32
    %55 = vector.broadcast %c240_i32 : i32 to vector<1x256xi32>
    %56 = arith.cmpi slt, %32, %55 : vector<1x256xi32>
    %57 = arith.andi %54, %50 : vector<1x256xi1>
    %58 = arith.andi %54, %52 : vector<1x256xi1>
    %59 = arith.andi %56, %50 : vector<1x256xi1>
    %60 = arith.andi %56, %52 : vector<1x256xi1>
    %61 = vector.broadcast %17 : f32 to vector<2x256xf32>
    %62 = arith.mulf %61, %11 : vector<2x256xf32>
    %63 = vector.broadcast %26 : f32 to vector<2x256xf32>
    %64 = arith.mulf %63, %12 : vector<2x256xf32>
    %65 = arith.addf %62, %64 : vector<2x256xf32>
    %66 = vector.broadcast %31 : f32 to vector<2x256xf32>
    %67 = arith.addf %65, %66 : vector<2x256xf32>
    %68 = vector.broadcast %13 : f32 to vector<2x256xf32>
    %69 = arith.mulf %68, %11 : vector<2x256xf32>
    %70 = vector.broadcast %22 : f32 to vector<2x256xf32>
    %71 = arith.mulf %70, %12 : vector<2x256xf32>
    %72 = arith.addf %69, %71 : vector<2x256xf32>
    %c17_i32 = arith.constant 17 : i32
    %73 = tpu.dynamic_rotate %72 by %c17_i32 dim 1 : vector<2x256xf32>, i32 -> vector<2x256xf32>
    %cst_11 = arith.constant 0.000000e+00 : f32
    %74 = vector.shape_cast %57 : vector<1x256xi1> to vector<1x256xi1>
    %75 = vector.broadcast %74 : vector<1x256xi1> to vector<2x256xi1>
    %76 = vector.broadcast %cst_11 : f32 to vector<2x256xf32>
    %77 = arith.select %75, %73, %76 : vector<2x256xi1>, vector<2x256xf32>
    %78 = arith.addf %67, %77 : vector<2x256xf32>
    %79 = vector.broadcast %14 : f32 to vector<2x256xf32>
    %80 = arith.mulf %79, %11 : vector<2x256xf32>
    %81 = vector.broadcast %23 : f32 to vector<2x256xf32>
    %82 = arith.mulf %81, %12 : vector<2x256xf32>
    %83 = arith.addf %80, %82 : vector<2x256xf32>
    %c16_i32_12 = arith.constant 16 : i32
    %84 = tpu.dynamic_rotate %83 by %c16_i32_12 dim 1 : vector<2x256xf32>, i32 -> vector<2x256xf32>
    %cst_13 = arith.constant 0.000000e+00 : f32
    %85 = vector.shape_cast %54 : vector<1x256xi1> to vector<1x256xi1>
    %86 = vector.broadcast %85 : vector<1x256xi1> to vector<2x256xi1>
    %87 = vector.broadcast %cst_13 : f32 to vector<2x256xf32>
    %88 = arith.select %86, %84, %87 : vector<2x256xi1>, vector<2x256xf32>
    %89 = arith.addf %78, %88 : vector<2x256xf32>
    %90 = vector.broadcast %15 : f32 to vector<2x256xf32>
    %91 = arith.mulf %90, %11 : vector<2x256xf32>
    %92 = vector.broadcast %24 : f32 to vector<2x256xf32>
    %93 = arith.mulf %92, %12 : vector<2x256xf32>
    %94 = arith.addf %91, %93 : vector<2x256xf32>
    %c15_i32_14 = arith.constant 15 : i32
    %95 = tpu.dynamic_rotate %94 by %c15_i32_14 dim 1 : vector<2x256xf32>, i32 -> vector<2x256xf32>
    %cst_15 = arith.constant 0.000000e+00 : f32
    %96 = vector.shape_cast %58 : vector<1x256xi1> to vector<1x256xi1>
    %97 = vector.broadcast %96 : vector<1x256xi1> to vector<2x256xi1>
    %98 = vector.broadcast %cst_15 : f32 to vector<2x256xf32>
    %99 = arith.select %97, %95, %98 : vector<2x256xi1>, vector<2x256xf32>
    %100 = arith.addf %89, %99 : vector<2x256xf32>
    %101 = vector.broadcast %16 : f32 to vector<2x256xf32>
    %102 = arith.mulf %101, %11 : vector<2x256xf32>
    %103 = vector.broadcast %25 : f32 to vector<2x256xf32>
    %104 = arith.mulf %103, %12 : vector<2x256xf32>
    %105 = arith.addf %102, %104 : vector<2x256xf32>
    %c1_i32_16 = arith.constant 1 : i32
    %106 = tpu.dynamic_rotate %105 by %c1_i32_16 dim 1 : vector<2x256xf32>, i32 -> vector<2x256xf32>
    %cst_17 = arith.constant 0.000000e+00 : f32
    %107 = vector.shape_cast %50 : vector<1x256xi1> to vector<1x256xi1>
    %108 = vector.broadcast %107 : vector<1x256xi1> to vector<2x256xi1>
    %109 = vector.broadcast %cst_17 : f32 to vector<2x256xf32>
    %110 = arith.select %108, %106, %109 : vector<2x256xi1>, vector<2x256xf32>
    %111 = arith.addf %100, %110 : vector<2x256xf32>
    %112 = vector.broadcast %18 : f32 to vector<2x256xf32>
    %113 = arith.mulf %112, %11 : vector<2x256xf32>
    %114 = vector.broadcast %27 : f32 to vector<2x256xf32>
    %115 = arith.mulf %114, %12 : vector<2x256xf32>
    %116 = arith.addf %113, %115 : vector<2x256xf32>
    %c255_i32 = arith.constant 255 : i32
    %117 = tpu.dynamic_rotate %116 by %c255_i32 dim 1 : vector<2x256xf32>, i32 -> vector<2x256xf32>
    %cst_18 = arith.constant 0.000000e+00 : f32
    %118 = vector.shape_cast %52 : vector<1x256xi1> to vector<1x256xi1>
    %119 = vector.broadcast %118 : vector<1x256xi1> to vector<2x256xi1>
    %120 = vector.broadcast %cst_18 : f32 to vector<2x256xf32>
    %121 = arith.select %119, %117, %120 : vector<2x256xi1>, vector<2x256xf32>
    %122 = arith.addf %111, %121 : vector<2x256xf32>
    %123 = vector.broadcast %19 : f32 to vector<2x256xf32>
    %124 = arith.mulf %123, %11 : vector<2x256xf32>
    %125 = vector.broadcast %28 : f32 to vector<2x256xf32>
    %126 = arith.mulf %125, %12 : vector<2x256xf32>
    %127 = arith.addf %124, %126 : vector<2x256xf32>
    %c241_i32 = arith.constant 241 : i32
    %128 = tpu.dynamic_rotate %127 by %c241_i32 dim 1 : vector<2x256xf32>, i32 -> vector<2x256xf32>
    %cst_19 = arith.constant 0.000000e+00 : f32
    %129 = vector.shape_cast %59 : vector<1x256xi1> to vector<1x256xi1>
    %130 = vector.broadcast %129 : vector<1x256xi1> to vector<2x256xi1>
    %131 = vector.broadcast %cst_19 : f32 to vector<2x256xf32>
    %132 = arith.select %130, %128, %131 : vector<2x256xi1>, vector<2x256xf32>
    %133 = arith.addf %122, %132 : vector<2x256xf32>
    %134 = vector.broadcast %20 : f32 to vector<2x256xf32>
    %135 = arith.mulf %134, %11 : vector<2x256xf32>
    %136 = vector.broadcast %29 : f32 to vector<2x256xf32>
    %137 = arith.mulf %136, %12 : vector<2x256xf32>
    %138 = arith.addf %135, %137 : vector<2x256xf32>
    %c240_i32_20 = arith.constant 240 : i32
    %139 = tpu.dynamic_rotate %138 by %c240_i32_20 dim 1 : vector<2x256xf32>, i32 -> vector<2x256xf32>
    %cst_21 = arith.constant 0.000000e+00 : f32
    %140 = vector.shape_cast %56 : vector<1x256xi1> to vector<1x256xi1>
    %141 = vector.broadcast %140 : vector<1x256xi1> to vector<2x256xi1>
    %142 = vector.broadcast %cst_21 : f32 to vector<2x256xf32>
    %143 = arith.select %141, %139, %142 : vector<2x256xi1>, vector<2x256xf32>
    %144 = arith.addf %133, %143 : vector<2x256xf32>
    %145 = vector.broadcast %21 : f32 to vector<2x256xf32>
    %146 = arith.mulf %145, %11 : vector<2x256xf32>
    %147 = vector.broadcast %30 : f32 to vector<2x256xf32>
    %148 = arith.mulf %147, %12 : vector<2x256xf32>
    %149 = arith.addf %146, %148 : vector<2x256xf32>
    %c239_i32 = arith.constant 239 : i32
    %150 = tpu.dynamic_rotate %149 by %c239_i32 dim 1 : vector<2x256xf32>, i32 -> vector<2x256xf32>
    %cst_22 = arith.constant 0.000000e+00 : f32
    %151 = vector.shape_cast %60 : vector<1x256xi1> to vector<1x256xi1>
    %152 = vector.broadcast %151 : vector<1x256xi1> to vector<2x256xi1>
    %153 = vector.broadcast %cst_22 : f32 to vector<2x256xf32>
    %154 = arith.select %152, %150, %153 : vector<2x256xi1>, vector<2x256xf32>
    %155 = arith.addf %144, %154 : vector<2x256xf32>
    %156 = arith.negf %155 : vector<2x256xf32>
    %157 = math.exp %156 : vector<2x256xf32>
    %cst_23 = arith.constant 1.000000e+00 : f32
    %158 = vector.broadcast %cst_23 : f32 to vector<2x256xf32>
    %159 = arith.addf %158, %157 : vector<2x256xf32>
    %160 = arith.divf %158, %159 : vector<2x256xf32>
    %161 = arith.mulf %155, %160 : vector<2x256xf32>
    %c0_24 = arith.constant 0 : index
    %c0_25 = arith.constant 0 : index
    %162 = vector.load %arg4[%c0_24, %c0_25] : memref<2x256xf32, #tpu.memory_space<vmem>>, vector<2x256xf32>
    tpu.vector_store %arg4[%c0_24, %c0_25], %161 {strides = array<i32>} : memref<2x256xf32, #tpu.memory_space<vmem>>, vector<2x256xf32>,
    return
  }
  func.func @transform_0(%arg0: i32) -> i32 {
    %c0_i32 = arith.constant 0 : i32
    %c0_i32_0 = arith.constant 0 : i32
    return %c0_i32 : i32
  }
  func.func @transform_1(%arg0: i32) -> i32 {
    %c0_i32 = arith.constant 0 : i32
    %c0_i32_0 = arith.constant 0 : i32
    return %c0_i32 : i32
  }
  func.func @transform_2(%arg0: i32) -> (i32, i32) {
    %c0_i32 = arith.constant 0 : i32
    %c0_i32_0 = arith.constant 0 : i32
    return %arg0, %c0_i32 : i32, i32
  }
  func.func @transform_3(%arg0: i32) -> (i32, i32) {
    %c0_i32 = arith.constant 0 : i32
    %c0_i32_0 = arith.constant 0 : i32
    return %arg0, %c0_i32 : i32, i32
  }
}

</mosaic_0001>

<bundles_post_ra>
// kernel: tpu_custom_call.1
= control target key start
LH: loop header
LB: loop body
LE: loop exit
PB: predicated region body
PF: predicated region fallthrough
CT: control target
= control target key end

     0   :  { %9 = vsyncpa [#allocation6], 0  ;;  %s774_s0 = inlined_call_operand.vmem [shape: f32[18], index: 0, kind: input, shape index: {}]   ;;  %s775_s1 = inlined_call_operand.<no memory space> [shape: f32[1], index: 1, kind: input, shape index: {}]   ;;  %s776_s2 = inlined_call_operand.hbm [shape: f32[8,256], index: 2, kind: input, shape index: {}]   ;;  %s777_s3 = inlined_call_operand.hbm [shape: f32[2,256], index: 3, kind: output, shape index: {}]  }
   0x1   :  { %10 = vsyncpa [#allocation4], 0 }
   0x2   :  { %11 = vsyncpa [#allocation5], 0  ;;  %s18_s14 = sshll.u32 %s774_s0, 4  ;;  %s19_s14 = int_to_ptr.vmem [resolvable:$true] %s18_s14 }
   0x3   :  { %s450_s15 = scalar_lea.vmem %s19_s14, 16  ;;  %p455_p1 = scmp.lt.s32.totalorder %s19_s14, %s19_s14 }
   0x4   :  { %p451_p0 = scmp.ne.s32.totalorder %s19_s14, %s450_s15  ;;  %p456_p2 = scmp.lt.s32.totalorder %s450_s15, %s450_s15 }
   0x6   :  { %p457_p3 = por %p456_p2, %p455_p1 }
   0x8   :  { %p458_p4 = pnand %p457_p3, %p451_p0 }
   0xa   :  { %461 = shalt.err (!%p458_p4)
}
   0xb   :  { %s512_s16 = smov [#allocation3]   ;;  %s513_s17 = smov [#allocation7]  }
   0xc   :  { %21 = dma.vmem_to_smem %s19_s14, 16, %s512_s16, [#allocation6]  }
   0xd   :  { %s30_s18 = sshll.u32 %s513_s17, 4  ;;  %s462_s21 = scalar_lea.hbm %s776_s2, 256  ;;  %s31_s18 = int_to_ptr.vmem [resolvable:$true] %s30_s18 }
   0xe   :  { %p463_p5 = scmp.ne.s32.totalorder %s776_s2, %s462_s21  ;;  %p466_p6 = scmp.lt.u32.totalorder %s462_s21, %s776_s2 }
  0x10   :  { %p468_p7 = pnand %p466_p6, %p463_p5 }
  0x12   :  { %471 = shalt.err (!%p468_p7)
}
  0x13   :  { %s472_s25 = scalar_lea.vmem %s31_s18, 256  ;;  %p477_p9 = scmp.lt.s32.totalorder %s31_s18, %s31_s18 }
  0x14   :  { %p473_p8 = scmp.ne.s32.totalorder %s31_s18, %s472_s25  ;;  %p478_p10 = scmp.lt.s32.totalorder %s472_s25, %s472_s25 }
  0x16   :  { %p479_p11 = por %p478_p10, %p477_p9 }
  0x18   :  { %p480_p12 = pnand %p479_p11, %p473_p8 }
  0x1a   :  { %483 = shalt.err (!%p480_p12)
}
  0x1b   :  { %33 = dma.hbm_to_vmem [thread:$0]  %s776_s2, 256, %s31_s18, [#allocation4]  }
  0x1c   :  { %506 = dma.done.wait [#allocation6], 16  }
  0x1d   :  { %507 = vsyncadd [#allocation6], 4294967280 }
  0x1e   :  { %508 = dma.done.wait [#allocation4], 256  }
  0x1f   :  { %509 = vsyncadd [#allocation4], 4294967040 }
  0x20   :  { %40 = sfence }
  0x21   :  { %v41_v0 = vld [vmem:[#allocation7] sm:$0xff]  ;;  %v42_v1 = vld [vmem:[#allocation7 + $0x8] sm:$0xff]  ;;  %vm43_vm0 = vcmask 1043456   ;;  %vm92_vm1 = vcmask 1047556   ;;  %s564_s2 = sld [smem:[#allocation3 + $0xa]]  ;;  %s566_s28 = sld [smem:[#allocation3 + $0x9]] }
  0x22   :  { %v44_v2 = vsel %vm43_vm0, %v41_v0, 0.0  ;;  %v51_v3 = vsel %vm43_vm0, %v42_v1, 0.0  ;;  %v58_v4 = vsel %vm43_vm0, %v41_v0, -inf  ;;  %v65_v5 = vsel %vm43_vm0, %v42_v1, -inf  ;;  %s568_s29 = sld [smem:[#allocation3 + $0x1]]  ;;  %s570_s30 = sld [smem:[#allocation3]] }
  0x23   :  { %v45_v6 = vrot.slane %v44_v2, 4  ;;  %v52_v7 = vrot.slane %v51_v3, 4  ;;  %v59_v8 = vrot.slane %v58_v4, 4  ;;  %v66_v9 = vrot.slane %v65_v5, 4  ;;  %s572_s4 = sld [smem:[#allocation3 + $0x2]]  ;;  %s574_s5 = sld [smem:[#allocation3 + $0xb]] }
  0x24   :  { %v74_v10 = vrot.slane %v41_v0, 4  ;;  %v75_v11 = vrot.slane %v42_v1, 4  ;;  %v93_v12 = vsel %vm92_vm1, %v41_v0, -inf  ;;  %v100_v13 = vsel %vm92_vm1, %v42_v1, -inf  ;;  %s578_s6 = sld [smem:[#allocation3 + $0x3]]  ;;  %s582_s7 = sld [smem:[#allocation3 + $0xc]] }
  0x25   :  { %v46_v14 = vadd.f32 %v45_v6, %v44_v2  ;;  %v53_v15 = vadd.f32 %v52_v7, %v51_v3  ;;  %v60_v16 = vmax.f32 %v58_v4, %v59_v8  ;;  %v67_v17 = vmax.f32 %v65_v5, %v66_v9  ;;  %s602_s8 = sld [smem:[#allocation3 + $0x5]]  ;;  %s604_s9 = sld [smem:[#allocation3 + $0xe]] }
  0x26   :  { %v78_v18 = vsel %vm43_vm0, %v74_v10, 0.0  ;;  %v85_v19 = vsel %vm43_vm0, %v75_v11, 0.0  ;;  %v94_v20 = vrot.slane %v93_v12, 4  ;;  %v101_v21 = vrot.slane %v100_v13, 4  ;;  %s514_s10 = smov 16   ;;  %s515_s11 = smov 17  }
  0x27   :  { %v47_v22 = vrot.slane %v46_v14, 2  ;;  %v54_v23 = vrot.slane %v53_v15, 2  ;;  %v61_v24 = vrot.slane %v60_v16, 2  ;;  %v68_v25 = vrot.slane %v67_v17, 2  ;;  %s616_s12 = sld [smem:[#allocation3 + $0x6]]  ;;  %s618_s13 = sld [smem:[#allocation3 + $0xf]] }
  0x28   :  { %v79_v26 = vrot.slane %v78_v18, 4  ;;  %v86_v27 = vrot.slane %v85_v19, 4  ;;  %v95_v28 = vmax.f32 %v93_v12, %v94_v20  ;;  %v102_v29 = vmax.f32 %v100_v13, %v101_v21  ;;  %s620_s14 = sld [smem:[#allocation3 + $0x7]]  ;;  %s622_s15 = sld [smem:[#allocation3 + $0x4]] }
  0x29   :  { %v48_v30 = vadd.f32 %v47_v22, %v46_v14  ;;  %v55_v31 = vadd.f32 %v54_v23, %v53_v15  ;;  %v62_v32 = vmax.f32 %v60_v16, %v61_v24  ;;  %v69_v33 = vmax.f32 %v67_v17, %v68_v25  ;;  %s625_s16 = sld [smem:[#allocation3 + $0xd]]  ;;  %s632_s17 = sld [smem:[#allocation3 + $0x10]] }
  0x2a   :  { %v80_v34 = vadd.f32 %v79_v26, %v78_v18  ;;  %v87_v35 = vadd.f32 %v86_v27, %v85_v19  ;;  %v96_v36 = vrot.slane %v95_v28, 2  ;;  %v103_v37 = vrot.slane %v102_v29, 2  ;;  %s516_s18 = smov 15   ;;  %s640_s19 = sld [smem:[#allocation3 + $0x8]] }
  0x2b   :  { %v49_v38 = vrot.slane %v48_v30, 1  ;;  %v56_v39 = vrot.slane %v55_v31, 1  ;;  %v63_v40 = vrot.slane %v62_v32, 1  ;;  %v70_v41 = vrot.slane %v69_v33, 1  ;;  %s643_s20 = sld [smem:[#allocation3 + $0x11]]  ;;  %s517_s21 = smov 1  }
  0x2c   :  { %v81_v42 = vrot.slane %v80_v34, 2  ;;  %v88_v43 = vrot.slane %v87_v35, 2  ;;  %v97_v44 = vmax.f32 %v95_v28, %v96_v36  ;;  %v104_v45 = vmax.f32 %v102_v29, %v103_v37  ;;  %s518_s22 = smov 127   ;;  %s519_s23 = smov 113  }
  0x2d   :  { %v64_v46 = vmax.f32 %v62_v32, %v63_v40  ;;  %v71_v47 = vmax.f32 %v69_v33, %v70_v41  ;;  %vm107_vm2 = vcmask 1040384   ;;  %v50_v52 = vadd.f32 %v49_v38, %v48_v30  ;;  %s520_s0 = smov 112   ;;  %s521_s24 = smov 111  }
  0x2e   :  { %v82_v48 = vadd.f32 %v81_v42, %v80_v34  ;;  %v89_v49 = vadd.f32 %v88_v43, %v87_v35  ;;  %v98_v50 = vrot.slane %v97_v44, 1  ;;  %v105_v51 = vrot.slane %v104_v45, 1 }
  0x2f   :  { %v57_v53 = vadd.f32 %v56_v39, %v55_v31  ;;  %v211_v54 = vstv %s564_s2  ;;  %v188_v55 = vstv %s566_s28  ;;  %v208_v60 = vstv %s568_s29 }
  0x30   :  { %v83_v56 = vrot.slane %v82_v48, 1  ;;  %v90_v57 = vrot.slane %v89_v49, 1  ;;  %v99_v58 = vmax.f32 %v97_v44, %v98_v50  ;;  %v106_v59 = vmax.f32 %v104_v45, %v105_v51 }
  0x31   :  { %v185_v61 = vstv %s570_s30  ;;  %v231_v4 = vstv %s572_s4  ;;  %v234_v5 = vstv %s574_s5  ;;  %v254_v19 = vstv %s578_s6 }
  0x32   :  { %v84_v62 = vadd.f32 %v83_v56, %v82_v48  ;;  %v91_v63 = vadd.f32 %v90_v57, %v89_v49  ;;  %v585_v0 = vsel %vm107_vm2, %v64_v46, %v99_v58  ;;  %v588_v1 = vsel %vm107_vm2, %v71_v47, %v106_v59 }
  0x33   :  { %v212_v2 = vmul.f32 %v211_v54, %v585_v0  ;;  %v189_v3 = vmul.f32 %v188_v55, %v585_v0  ;;  %v213_v8 = vmul.f32 %v211_v54, %v588_v1  ;;  %v190_v9 = vmul.f32 %v188_v55, %v588_v1 }
  0x34   :  { %v595_v6 = vsel %vm107_vm2, %v50_v52, %v84_v62  ;;  %v598_v7 = vsel %vm107_vm2, %v57_v53, %v91_v63  ;;  %v236_v17 = vmul.f32 %v234_v5, %v588_v1  ;;  %v235_v18 = vmul.f32 %v234_v5, %v585_v0 }
  0x35   :  { %v209_v10 = vmul.f32 %v208_v60, %v595_v6  ;;  %v210_v11 = vmul.f32 %v208_v60, %v598_v7  ;;  %v186_v12 = vmul.f32 %v185_v61, %v595_v6  ;;  %v187_v13 = vmul.f32 %v185_v61, %v598_v7 }
  0x36   :  { %v233_v16 = vmul.f32 %v231_v4, %v598_v7  ;;  %v232_v22 = vmul.f32 %v231_v4, %v595_v6  ;;  %v257_v23 = vstv %s582_s7  ;;  %v256_v24 = vmul.f32 %v254_v19, %v598_v7 }
  0x37   :  { %v214_v14 = vadd.f32 %v212_v2, %v209_v10  ;;  %v191_v15 = vadd.f32 %v189_v3, %v186_v12  ;;  %v215_v20 = vadd.f32 %v213_v8, %v210_v11  ;;  %v192_v21 = vadd.f32 %v190_v9, %v187_v13 }
  0x38   :  { %v238_v25 = vadd.f32 %v236_v17, %v233_v16  ;;  %v259_v26 = vmul.f32 %v257_v23, %v588_v1  ;;  %v277_v27 = vstv %s602_s8  ;;  %v280_v28 = vstv %s604_s9 }
  0x39   :  { %216 = vrot.lane.b32.xlu1 %v214_v14, %s514_s10  ;;  %193 = vrot.lane.b32.xlu0 %v191_v15, %s515_s11  ;;  %v237_v29 = vadd.f32 %v235_v18, %v232_v22  ;;  %v255_v30 = vmul.f32 %v254_v19, %v595_v6  ;;  %v258_v31 = vmul.f32 %v257_v23, %v585_v0  ;;  %v300_v38 = vstv %s616_s12 }
  0x3a   :  { %v279_v32 = vmul.f32 %v277_v27, %v598_v7  ;;  %v282_v33 = vmul.f32 %v280_v28, %v588_v1  ;;  %v278_v34 = vmul.f32 %v277_v27, %v595_v6  ;;  %v281_v35 = vmul.f32 %v280_v28, %v585_v0 }
  0x3b   :  { %v261_v36 = vadd.f32 %v259_v26, %v256_v24  ;;  %v260_v37 = vadd.f32 %v258_v31, %v255_v30  ;;  %v303_v39 = vstv %s618_s13  ;;  %v323_v40 = vstv %s620_s14 }
  0x3c   :  { %v174_v41 = vstv %s622_s15  ;;  %v284_v42 = vadd.f32 %v282_v33, %v279_v32  ;;  %v283_v43 = vadd.f32 %v281_v35, %v278_v34  ;;  %v177_v45 = vstv %s625_s16 }
  0x3d   :  { %218 = vrot.lane.b32.xlu1 %v215_v20, %s514_s10  ;;  %195 = vrot.lane.b32.xlu0 %v192_v21, %s515_s11  ;;  %v176_v44 = vmul.f32 %v174_v41, %v598_v7  ;;  %v302_v46 = vmul.f32 %v300_v38, %v598_v7  ;;  %v305_v47 = vmul.f32 %v303_v39, %v588_v1  ;;  %v326_v52 = vstv %s632_s17 }
  0x3e   :  { %v178_v48 = vmul.f32 %v177_v45, %v585_v0  ;;  %v179_v49 = vmul.f32 %v177_v45, %v588_v1  ;;  %v301_v50 = vmul.f32 %v300_v38, %v595_v6  ;;  %v304_v51 = vmul.f32 %v303_v39, %v585_v0 }
  0x3f   :  { %v175_v53 = vmul.f32 %v174_v41, %v595_v6  ;;  %v325_v56 = vmul.f32 %v323_v40, %v598_v7  ;;  %v328_v57 = vmul.f32 %v326_v52, %v588_v1  ;;  %v324_v58 = vmul.f32 %v323_v40, %v595_v6 }
  0x40   :  { %v181_v54 = vadd.f32 %v179_v49, %v176_v44  ;;  %v327_v59 = vmul.f32 %v326_v52, %v585_v0  ;;  %v307_v60 = vadd.f32 %v305_v47, %v302_v46  ;;  %v306_v61 = vadd.f32 %v304_v51, %v301_v50 }
  0x41   :  { %241 = vrot.lane.b32.xlu1 %v238_v25, %s516_s18  ;;  %239 = vrot.lane.b32.xlu0 %v237_v29, %s516_s18  ;;  %v180_v55 = vadd.f32 %v178_v48, %v175_v53  ;;  %v346_v62 = vstv %s640_s19  ;;  %v349_v63 = vstv %s643_s20  ;;  %v330_v2 = vadd.f32 %v328_v57, %v325_v56 }
  0x42   :  { %v329_v3 = vadd.f32 %v327_v59, %v324_v58  ;;  %v348_v4 = vmul.f32 %v346_v62, %v598_v7  ;;  %v351_v5 = vmul.f32 %v349_v63, %v588_v1  ;;  %v347_v8 = vmul.f32 %v346_v62, %v595_v6 }
  0x43   :  { %v350_v9 = vmul.f32 %v349_v63, %v585_v0  ;;  %v131_v12 = vlaneseq  ;;  %v182_v17 = vstv %s775_s1  ;;  %s522_s1 = smov [#allocation8]  }
  0x44   :  { %v353_v10 = vadd.f32 %v351_v5, %v348_v4  ;;  %v183_v21 = vadd.f32 %v182_v17, %v180_v55  ;;  %v184_v26 = vadd.f32 %v182_v17, %v181_v54  ;;  %s401_s27 = sshll.u32 %s522_s1, 4  ;;  %s402_s27 = int_to_ptr.vmem [resolvable:$true] %s401_s27 }
  0x45   :  { %264 = vrot.lane.b32.xlu1 %v261_v36, %s517_s21  ;;  %262 = vrot.lane.b32.xlu0 %v260_v37, %s517_s21  ;;  %v352_v11 = vadd.f32 %v350_v9, %v347_v8  ;;  %v666_v13 = vand.u32 127, %v131_v12  ;;  %s484_s2 = scalar_lea.vmem %s402_s27, 64  ;;  %p489_p0 = scmp.lt.s32.totalorder %s402_s27, %s402_s27 }
  0x46   :  { %p485_p13 = scmp.ne.s32.totalorder %s402_s27, %s484_s2  ;;  %p490_p1 = scmp.lt.s32.totalorder %s484_s2, %s484_s2 }
  0x47   :  { %v138_v7 = vand.u32 15, %v666_v13  ;;  %v670_v14 = vadd.s32 128, %v666_v13  ;;  %vm162_vm3 = vcmp.ge.s32.totalorder %v666_v13, 16  ;;  %vm197_vm5 = vcmp.lt.s32.totalorder %v666_v13, 17 }
  0x48   :  { %vm220_vm8 = vcmp.lt.s32.totalorder %v666_v13, 16  ;;  %vm243_vm10 = vcmp.lt.s32.totalorder %v666_v13, 15  ;;  %vm266_vm11 = vcmp.lt.s32.totalorder %v666_v13, 1  ;;  %vm289_vm13 = vcmp.lt.s32.totalorder %v666_v13, 127  ;;  %p491_p2 = por %p490_p1, %p489_p0 }
  0x49   :  { %287 = vrot.lane.b32.xlu1 %v284_v42, %s518_s22  ;;  %285 = vrot.lane.b32.xlu0 %v283_v43, %s518_s22  ;;  %vm673_vm4 = vcmp.ne.s32.totalorder %v138_v7, 0  ;;  %v145_v15 = vand.u32 15, %v670_v14  ;;  %vm693_vm9 = vcmp.ne.s32.totalorder %v138_v7, 15  ;;  %vm165_vm15 = vcmp.lt.s32.totalorder %v670_v14, 240 }
  0x4a   :  { %vm166_vm6 = vmand %vm162_vm3, %vm673_vm4  ;;  %vm312_vm0 = vcmp.lt.s32.totalorder %v666_v13, 113  ;;  %vm335_vm2 = vcmp.lt.s32.totalorder %v666_v13, 112  ;;  %p492_p3 = pnand %p491_p2, %p485_p13 }
  0x4b   :  { %vm686_vm7 = vcmp.ne.s32.totalorder %v145_v15, 0  ;;  %vm705_vm12 = vmand %vm162_vm3, %vm693_vm9  ;;  %vm712_vm14 = vcmp.ne.s32.totalorder %v145_v15, 15 }
  0x4c   :  { %vm742_vm1 = vmand %vm165_vm15, %vm686_vm7 }
  0x4d   :  { %310 = vrot.lane.b32.xlu1 %v307_v60, %s519_s23  ;;  %308 = vrot.lane.b32.xlu0 %v306_v61, %s519_s23 }
  0x51   :  { %333 = vrot.lane.b32.xlu1 %v330_v2, %s520_s0  ;;  %331 = vrot.lane.b32.xlu0 %v329_v3, %s520_s0 }
  0x55   :  { %356 = vrot.lane.b32.xlu1 %v353_v10, %s521_s24  ;;  %354 = vrot.lane.b32.xlu0 %v352_v11, %s521_s24 }
  0xab   :  { %v217_v1 = vpop.permute.xlu1 %216  ;;  %v194_v6 = vpop.permute.xlu0 %193 }
  0xaf   :  { %v219_v16 = vpop.permute.xlu1 %218  ;;  %v196_v18 = vpop.permute.xlu0 %195 }
  0xb0   :  { %v199_v19 = vsel %vm197_vm5, %v196_v18, %v194_v6  ;;  %v198_v22 = vsel %vm197_vm5, %v194_v6, %v196_v18  ;;  %v222_v29 = vsel %vm220_vm8, %v219_v16, %v217_v1  ;;  %v221_v41 = vsel %vm220_vm8, %v217_v1, %v219_v16 }
  0xb1   :  { %v204_v23 = vsel %vm166_vm6, %v199_v19, 0.0  ;;  %v205_v27 = vsel %vm686_vm7, %v198_v22, 0.0  ;;  %v227_v36 = vsel %vm162_vm3, %v222_v29, 0.0  ;;  %vm358_vm3 = vcmp.lt.s32.totalorder %v666_v13, 111 }
  0xb2   :  { %v206_v30 = vadd.f32 %v204_v23, %v183_v21  ;;  %v207_v33 = vadd.f32 %v205_v27, %v184_v26 }
  0xb3   :  { %v242_v24 = vpop.permute.xlu1 %241  ;;  %v240_v25 = vpop.permute.xlu0 %239 }
  0xb4   :  { %v245_v35 = vsel %vm243_vm10, %v242_v24, %v240_v25  ;;  %v229_v38 = vadd.f32 %v227_v36, %v206_v30  ;;  %v244_v39 = vsel %vm243_vm10, %v240_v25, %v242_v24  ;;  %v230_v45 = vadd.f32 %v221_v41, %v207_v33 }
  0xb5   :  { %v250_v42 = vsel %vm705_vm12, %v245_v35, 0.0  ;;  %v251_v48 = vsel %vm712_vm14, %v244_v39, 0.0 }
  0xb6   :  { %v252_v50 = vadd.f32 %v250_v42, %v229_v38  ;;  %v253_v56 = vadd.f32 %v251_v48, %v230_v45 }
  0xb7   :  { %v265_v31 = vpop.permute.xlu1 %264  ;;  %v263_v32 = vpop.permute.xlu0 %262 }
  0xb8   :  { %v268_v40 = vsel %vm266_vm11, %v265_v31, %v263_v32  ;;  %v267_v46 = vsel %vm266_vm11, %v263_v32, %v265_v31 }
  0xb9   :  { %v273_v49 = vsel %vm673_vm4, %v268_v40, 0.0  ;;  %v274_v52 = vsel %vm686_vm7, %v267_v46, 0.0 }
  0xba   :  { %v275_v57 = vadd.f32 %v273_v49, %v252_v50  ;;  %v276_v63 = vadd.f32 %v274_v52, %v253_v56 }
  0xbb   :  { %v288_v43 = vpop.permute.xlu1 %287  ;;  %v286_v44 = vpop.permute.xlu0 %285 }
  0xbc   :  { %v290_v47 = vsel %vm289_vm13, %v286_v44, %v288_v43  ;;  %v291_v51 = vsel %vm289_vm13, %v288_v43, %v286_v44 }
  0xbd   :  { %v296_v53 = vsel %vm693_vm9, %v290_v47, 0.0  ;;  %v297_v61 = vsel %vm712_vm14, %v291_v51, 0.0 }
  0xbe   :  { %v298_v2 = vadd.f32 %v296_v53, %v275_v57  ;;  %v299_v8 = vadd.f32 %v297_v61, %v276_v63 }
  0xbf   :  { %v311_v54 = vpop.permute.xlu1 %310  ;;  %v309_v55 = vpop.permute.xlu0 %308 }
  0xc0   :  { %v313_v59 = vsel %vm312_vm0, %v309_v55, %v311_v54  ;;  %v314_v60 = vsel %vm312_vm0, %v311_v54, %v309_v55 }
  0xc1   :  { %v319_v62 = vsel %vm673_vm4, %v313_v59, 0.0  ;;  %v320_v3 = vsel %vm742_vm1, %v314_v60, 0.0  ;;  %vm173_vm4 = vmand %vm165_vm15, %vm712_vm14 }
  0xc2   :  { %v321_v9 = vadd.f32 %v319_v62, %v298_v2  ;;  %v322_v7 = vadd.f32 %v320_v3, %v299_v8 }
  0xc3   :  { %v334_v4 = vpop.permute.xlu1 %333  ;;  %v332_v5 = vpop.permute.xlu0 %331 }
  0xc4   :  { %v337_v10 = vsel %vm335_vm2, %v334_v4, %v332_v5  ;;  %v336_v11 = vsel %vm335_vm2, %v332_v5, %v334_v4 }
  0xc5   :  { %v343_v12 = vsel %vm165_vm15, %v337_v10, 0.0  ;;  %v344_v0 = vadd.f32 %v336_v11, %v321_v9 }
  0xc6   :  { %v345_v15 = vadd.f32 %v343_v12, %v322_v7 }
  0xc7   :  { %v357_v1 = vpop.permute.xlu1 %356  ;;  %v355_v6 = vpop.permute.xlu0 %354 }
  0xc8   :  { %v359_v16 = vsel %vm358_vm3, %v355_v6, %v357_v1  ;;  %v360_v17 = vsel %vm358_vm3, %v357_v1, %v355_v6 }
  0xc9   :  { %v365_v18 = vsel %vm693_vm9, %v359_v16, 0.0  ;;  %v366_v19 = vsel %vm173_vm4, %v360_v17, 0.0 }
  0xca   :  { %v367_v20 = vadd.f32 %v365_v18, %v344_v0  ;;  %v368_v21 = vadd.f32 %v366_v19, %v345_v15 }
  0xcc   :  { %v428_v22 = vmul.f32 -1.442695, %v367_v20  ;;  %v429_v13 = vmul.f32 -1.442695, %v368_v21 }
  0xce   :  { %442 = vpow2.f32 %v428_v22 }
  0xcf   :  { %444 = vpow2.f32 %v429_v13 }
  0xd8   :  { %v443_v23 = vpop.eup %442 }
  0xd9   :  { %v445_v24 = vpop.eup %444  ;;  %v375_v14 = vadd.f32 1.0, %v443_v23 }
  0xda   :  { %v376_v25 = vadd.f32 1.0, %v445_v24 }
  0xdb   :  { %446 = vrcp.f32 %v375_v14 }
  0xdc   :  { %448 = vrcp.f32 %v376_v25 }
  0xe5   :  { %v447_v26 = vpop.eup %446 }
  0xe6   :  { %v449_v27 = vpop.eup %448  ;;  %v381_v29 = vmul.f32 %v447_v26, %v367_v20 }
  0xe7   :  { %v382_v28 = vmul.f32 %v449_v27, %v368_v21 }
  0xe9   :  { %v385_v30 = vcombine.low %v381_v29, %v382_v28 }
  0xeb   :  { %430 = vst.sshfl [vmem:[#allocation8] sm:$0x33 pattern:$0x76325410] %v385_v30 }
  0xec   :  { %495 = shalt.err (!%p492_p3)
}
  0xed   :  { %s496_s30 = scalar_lea.hbm %s777_s3, 64 }
  0xee   :  { %p497_p4 = scmp.ne.s32.totalorder %s777_s3, %s496_s30  ;;  %p500_p5 = scmp.lt.u32.totalorder %s496_s30, %s777_s3 }
  0xf0   :  { %p502_p6 = pnand %p500_p5, %p497_p4 }
  0xf2   :  { %505 = shalt.err (!%p502_p6)
}
  0xf3   :  { %404 = dma.vmem_to_hbm [thread:$0]  %s402_s27, 64, %s777_s3, [#allocation5]  }
  0xf4   :  { %510 = dma.done.wait [#allocation5], 64  }
  0xf5   :  { %511 = vsyncadd [#allocation5], 4294967232 }
  0xf6   :  { %408 = vsyncpa [#allocation4], 1 }
  0xf7   :  { %409 = vsyncpa [#allocation5], 1 }
  0xf8   :  { %410 = vsyncpa [#allocation6], 1 }

</bundles_post_ra>
